<compile_context>
chip_gen: v5e
topology: v5e:2x2
jax: 0.10.0
libtpu: 0.0.40
codegen_flags: <defaults>
</compile_context>

<pallas_src>
import functools

import jax
import jax.numpy as jnp
from jax.experimental import pallas as pl
from jax.experimental.pallas import tpu as pltpu


def _round_up(x: int, m: int) -> int:
    return ((x + m - 1) // m) * m


def _rel_pe_kernel(diag_ref, out_ref, *, ti: int, tj: int, d_k: int,
                   l_win: int, delta: int, q_off: int):
    """Emit one dense (ti, tj * d_k) lane-dense tile of the relative-PE table.

    diag_ref: (1, Dpad) VMEM-resident, lane-flattened (zero-padded) diag slab:
              diag_flat[p * d_k + v] = weight[clip(p - (S_pad - 1), ...), v].
    out_ref : (ti, tj * d_k) output tile covering rows  bi*ti + r  and columns
              bj*tj + u  (columns flattened with d_k).

    Row r of the tile needs  diag_flat[base + (ti - 1 - r) * d_k + c]  for
    c in [0, tj * d_k).  The union window is loaded once, broadcast across the
    ti sublanes, and row r is rotated right by (delta + r * d_k) with a single
    strided pltpu.roll (Transformer-XL "relative shift"); the wanted values
    then line up at the static, 128-aligned lane offset q_off for every row,
    so the whole tile is written with one dense (unmasked) store.
    """
    bi = pl.program_id(0)
    bj = pl.program_id(1)
    n_row_blocks = pl.num_programs(0)

    # Window start (in elements).  Both terms are multiples of 128 lanes by
    # construction of ti / tj, so the dynamic slice below stays vreg-aligned.
    base = bj * (tj * d_k) + (n_row_blocks - 1 - bi) * (ti * d_k)
    base = pl.multiple_of(base, 128)

    win = diag_ref[:, pl.ds(base, l_win)]               # (1, l_win)
    win = jnp.broadcast_to(win, (ti, l_win))            # sublane broadcast
    # One strided XLU rotate handles all ti rows at once.
    rolled = pltpu.roll(win, delta, axis=1, stride=d_k, stride_axis=0)
    out_ref[...] = rolled[:, q_off:q_off + tj * d_k].astype(out_ref.dtype)


def _pick_tiles(seq_len: int, d_k: int, out_itemsize: int,
                row_target: int = 32,
                tile_bytes_target: int = 8 << 20):
    """Choose (TI rows, TJ cols) per grid step.

    TI is a multiple of the sublane packing (8/16/32 for 4/2/1-byte outputs)
    with TI*d_k a multiple of 128 lanes (keeps every window base 128-aligned).
    TJ grows until the output tile reaches ~tile_bytes_target so write-back
    DMAs sit near the HBM roofline while the double-buffered footprint stays
    well inside v7x's 64 MiB VMEM.
    """
    sub_q = max(8, 32 // out_itemsize)
    ti_q = sub_q
    while (ti_q * d_k) % 128 != 0:
        ti_q += sub_q
    s_q = _round_up(seq_len, ti_q)
    ti = ti_q
    while ti < row_target and ti * 2 <= s_q:
        ti *= 2
    tj = ti
    while tj * 2 <= s_q and ti * (tj * 2) * d_k * out_itemsize <= tile_bytes_target:
        tj *= 2
    return ti, tj


def relative_position_encoding(table: jax.Array, seq_len: int,
                               max_length: int, *,
                               out_dtype=None) -> jax.Array:
    """Pallas forward of RelativePositionEncoding: returns (seq_len, seq_len, d_k).

    `out_dtype` lets downstream consumers request e.g. bf16 (halves the HBM
    write-back, the kernel's only real cost); defaults to the table dtype.
    """
    v, d_k = table.shape
    assert v == 2 * max_length - 1, "table must have 2*max_length-1 rows"
    assert seq_len >= 1
    out_dtype = jnp.dtype(table.dtype if out_dtype is None else out_dtype)
    in_itemsize = jnp.dtype(table.dtype).itemsize
    out_itemsize = out_dtype.itemsize

    ti, tj = _pick_tiles(seq_len, d_k, out_itemsize)
    s_pad = _round_up(seq_len, max(ti, tj))             # tj is a multiple of ti
    nb_i, nb_j = s_pad // ti, s_pad // tj

    # Static roll geometry: row r of a tile wants window[(ti-1-r)*d_k + c];
    # rotating row r right by delta + r*d_k lines everything up at the
    # 128-aligned lane offset q_off.
    q_off = _round_up((ti - 1) * d_k, 128)
    delta = q_off - (ti - 1) * d_k
    l_win = _round_up(q_off + tj * d_k, 128)
    # Padded diag length: every window [base, base + l_win) stays in bounds,
    # where max(base) = (2*s_pad - ti - tj) * d_k.
    d_pad = (2 * s_pad - ti - tj) * d_k + l_win

    # diag[t] = table[clip(t - (s_pad - 1), -(M - 1), M - 1) + M - 1],
    # so that out[i, j, :] = diag[j - i + s_pad - 1, :].
    t = jnp.arange(2 * s_pad - 1, dtype=jnp.int32)
    idx = (jnp.clip(t - (s_pad - 1), -(max_length - 1), max_length - 1)
           + (max_length - 1))
    diag = table[idx].reshape(-1)                        # ((2*s_pad-1)*d_k,)
    diag = jnp.pad(diag, (0, d_pad - diag.shape[0])).reshape(1, d_pad)

    kernel = functools.partial(_rel_pe_kernel, ti=ti, tj=tj, d_k=d_k,
                               l_win=l_win, delta=delta, q_off=q_off)

    # Real footprint: double-buffered output tile + resident diag (counted
    # twice for safety) + the two (ti, l_win) roll temporaries + slack.
    # Capped at 56 MiB so the request also fits v7x (64 MiB/TC) with headroom.
    out_tile = ti * tj * d_k * out_itemsize
    need = (2 * out_tile + 2 * d_pad * in_itemsize
            + 2 * ti * l_win * in_itemsize)
    vmem_limit = int(min(max(need + (4 << 20), 16 << 20), 56 << 20))

    out_flat = pl.pallas_call(
        kernel,
        out_shape=jax.ShapeDtypeStruct((s_pad, s_pad * d_k), out_dtype),
        grid=(nb_i, nb_j),
        in_specs=[pl.BlockSpec((1, d_pad), lambda i, j: (0, 0))],
        out_specs=pl.BlockSpec((ti, tj * d_k), lambda i, j: (i, j)),
        compiler_params=pltpu.CompilerParams(
            dimension_semantics=("parallel", "parallel"),
            vmem_limit_bytes=vmem_limit),
    )(diag)

    out = out_flat[:seq_len, :seq_len * d_k]
    return out.reshape(seq_len, seq_len, d_k)


def relative_position_encoding_ref(table: jax.Array, seq_len: int,
                                   max_length: int) -> jax.Array:
    """Pure-JAX reference mirroring the PyTorch forward."""
    r = jnp.arange(seq_len)
    rel = r[None, :] - r[:, None]
    clipped = jnp.clip(rel, -(max_length - 1), max_length - 1)
    return table[clipped + max_length - 1]


if __name__ == "__main__":
    d_k = 32
    max_length = 16
    seq_len = 8

    # Deterministic parameter init (nn.Embedding default ~ N(0, 1)).
    key = jax.random.PRNGKey(0)
    table = jax.random.normal(key, (2 * max_length - 1, d_k), dtype=jnp.float32)

    out = relative_position_encoding(table, seq_len, max_length)
    out = jax.block_until_ready(out)
    ref = relative_position_encoding_ref(table, seq_len, max_length)
    assert out.shape == (seq_len, seq_len, d_k)
    assert jnp.allclose(out, ref, atol=1e-6), "mismatch vs reference (S=8)"

    # Second small shape: seq_len > max_length (exercises clipping) and not a
    # multiple of the tile size (exercises padding, the multi-block 2-D grid
    # and nonzero dynamic window bases).
    seq_len2 = 40
    out2 = relative_position_encoding(table, seq_len2, max_length)
    out2 = jax.block_until_ready(out2)
    ref2 = relative_position_encoding_ref(table, seq_len2, max_length)
    assert out2.shape == (seq_len2, seq_len2, d_k)
    assert jnp.allclose(out2, ref2, atol=1e-6), "mismatch vs reference (S=40)"

    print("KERNEL_OK")
</pallas_src>

<mosaic_0001>
module attributes {stable_mosaic.version = 11 : i64} {
  func.func @_rel_pe_kernel(%arg0: i32, %arg1: i32, %arg2: memref<1x512xf32, #tpu.memory_space<vmem>>, %arg3: memref<8x256xf32, #tpu.memory_space<vmem>>) attributes {dimension_semantics = [#tpu.dimension_semantics<parallel>, #tpu.dimension_semantics<parallel>], iteration_bounds = array<i64: 1, 1>, scalar_prefetch = 0 : i64, scratch_operands = 0 : i64, tpu.core_type = #tpu.core_type<tc>, window_params = [{pipeline_mode = #tpu.pipeline_mode<synchronous>, transform_indices = @transform_0, window_bounds = array<i64: 1, 512>}, {transform_indices = @transform_1, window_bounds = array<i64: 8, 256>}]} {
    %c256_i32 = arith.constant 256 : i32
    %0 = arith.muli %arg1, %c256_i32 : i32
    %c0_i32 = arith.constant 0 : i32
    %1 = arith.subi %c0_i32, %arg0 : i32
    %c256_i32_0 = arith.constant 256 : i32
    %2 = arith.muli %1, %c256_i32_0 : i32
    %3 = arith.addi %0, %2 : i32
    %4 = tpu.assume_multiple %3, 128 : i32
    %c0 = arith.constant 0 : index
    %5 = arith.index_cast %4 : i32 to index
    %6 = vector.load %arg2[%c0, %5] : memref<1x512xf32, #tpu.memory_space<vmem>>, vector<1x512xf32>
    %7 = vector.shape_cast %6 : vector<1x512xf32> to vector<1x512xf32>
    %8 = vector.broadcast %7 : vector<1x512xf32> to vector<8x512xf32>
    %c32_i32 = arith.constant 32 : i32
    %9 = tpu.dynamic_rotate %8 by %c32_i32 dim 1 {stride = 32 : si32, stride_dimension = 0 : si32} : vector<8x512xf32>, i32 -> vector<8x512xf32>
    %10 = vector.extract_strided_slice %9 {offsets = [0, 256], sizes = [8, 256], strides = [1, 1]} : vector<8x512xf32> to vector<8x256xf32>
    %c0_1 = arith.constant 0 : index
    %c0_2 = arith.constant 0 : index
    %11 = vector.load %arg3[%c0_1, %c0_2] : memref<8x256xf32, #tpu.memory_space<vmem>>, vector<8x256xf32>
    tpu.vector_store %arg3[%c0_1, %c0_2], %10 {strides = array<i32>} : memref<8x256xf32, #tpu.memory_space<vmem>>, vector<8x256xf32>,
    return
  }
  func.func @transform_0(%arg0: i32, %arg1: i32) -> (i32, i32) {
    %c0_i32 = arith.constant 0 : i32
    %c0_i32_0 = arith.constant 0 : i32
    %c0_i32_1 = arith.constant 0 : i32
    return %c0_i32, %c0_i32_0 : i32, i32
  }
  func.func @transform_1(%arg0: i32, %arg1: i32) -> (i32, i32) {
    %c0_i32 = arith.constant 0 : i32
    return %arg0, %arg1 : i32, i32
  }
}

</mosaic_0001>

<bundles_post_ra>
// kernel: tpu_custom_call.1
= control target key start
LH: loop header
LB: loop body
LE: loop exit
PB: predicated region body
PF: predicated region fallthrough
CT: control target
= control target key end

     0   :  { %6 = vsyncpa [#allocation3], 0  ;;  %s143_s0 = inlined_call_operand.hbm [shape: f32[1,512], index: 0, kind: input, shape index: {}]   ;;  %s144_s1 = inlined_call_operand.hbm [shape: f32[8,256], index: 1, kind: output, shape index: {}]  }
   0x1   :  { %7 = vsyncpa [#allocation4], 0  ;;  %s13_s8 = sshll.u32 %s143_s0, 4  ;;  %s124_s9 = smov [#allocation2]   ;;  %s14_s8 = int_to_ptr.hbm [resolvable:$true] %s13_s8 }
   0x2   :  { %s15_s10 = sshll.u32 %s124_s9, 4  ;;  %s16_s10 = int_to_ptr.vmem [resolvable:$true] %s15_s10 }
   0x3   :  { %18 = dma.hbm_to_vmem [thread:$0]  %s14_s8, 64, %s16_s10, [#allocation3]  }
   0x4   :  { %120 = dma.done.wait [#allocation3], 64  }
   0x5   :  { %121 = vsyncadd [#allocation3], 4294967232  ;;  %v30_v0 = vld [vmem:[#allocation2] sm:$0xf]  ;;  %s125_s11 = smov 32   ;;  %v44_v4 = vlaneseq  ;;  %s126_s0 = smov [#allocation5]  }
   0x6   :  { %v32_v1 = vperm.slane %v30_v0, 1  ;;  %v34_v2 = vperm.slane %v30_v0, 3  ;;  %v33_v3 = vperm.slane %v30_v0, 2  ;;  %s56_s12 = sshll.u32 %s126_s0, 4  ;;  %s58_s15 = sshll.u32 %s144_s1, 4  ;;  %s57_s12 = int_to_ptr.vmem [resolvable:$true] %s56_s12  ;;  %s59_s15 = int_to_ptr.hbm [resolvable:$true] %s58_s15 }
   0x7   :  { %v45_v6 = vand.u32 127, %v44_v4 }
   0x8   :  { %38 = vrot.lane.b32.xlu0 %v32_v1, %s125_s11  ;;  %42 = vrot.lane.b32.xlu1 %v34_v2, %s125_s11 }
   0x9   :  { %vm46_vm0 = vcmp.lt.s32.totalorder %v45_v6, 32 }
  0x10   :  { %40 = vrot.lane.b32.xlu0 %v33_v3, %s125_s11 }
  0x7a   :  { %v39_v5 = vpop.permute.xlu0 %38  ;;  %v43_v7 = vpop.permute.xlu1 %42 }
  0x82   :  { %v41_v8 = vpop.permute.xlu0 %40 }
  0x83   :  { %v47_v9 = vsel %vm46_vm0, %v41_v8, %v43_v7  ;;  %v48_v10 = vsel %vm46_vm0, %v39_v5, %v41_v8 }
  0x84   :  { %49 = vst [vmem:[#allocation5] sm:$0xff] %v48_v10 }
  0x85   :  { %50 = vst [vmem:[#allocation5 + $0x8] sm:$0xff] %v47_v9 }
  0x86   :  { %61 = dma.vmem_to_hbm [thread:$0]  %s57_s12, 256, %s59_s15, [#allocation4]  }
  0x87   :  { %122 = dma.done.wait [#allocation4], 256  }
  0x88   :  { %123 = vsyncadd [#allocation4], 4294967040 }
  0x89   :  { %66 = vsyncpa [#allocation3], 1 }
  0x8a   :  { %67 = vsyncpa [#allocation4], 1 }

</bundles_post_ra>
